<compile_context>
chip_gen: v7x
topology: tpu7x:2x2x1
jax: 0.10.0
libtpu: 0.0.40
codegen_flags: <defaults>
</compile_context>

<pallas_src>
import numpy as np
import jax
import jax.numpy as jnp
from jax.experimental import pallas as pl
from jax.experimental.pallas import tpu as pltpu

# ---- config (mirrors node['student'] / node['teacher']) ----
FIRST = 8                               # partial_obs_dim
T = 4                                   # time_series_len
NUM_CHANNELS = 28                       # 16 + 12 (hard-coded split in evaluate_encoder)
CHANNEL_SIZES = [NUM_CHANNELS, 32, 32]  # after channel_sizes.insert(0, num_channels)
KERNEL_SIZE = 3
DILATION = 1
PAD = (KERNEL_SIZE - 1) * DILATION // 2
TEACHER_NUM_OBS = 24
TEACHER_POLICY = [32, 32]
NUM_ACTS = 8
OBS_OUT_DIM = TEACHER_NUM_OBS - FIRST
STATE_DIM = FIRST + NUM_CHANNELS * T    # 8 + 28*4 = 120
C1 = CHANNEL_SIZES[1]
C2 = CHANNEL_SIZES[2]

LANES = 128
PADDED_IN = 128                         # state 120 -> 128 lanes (lane-dense input)
HID = T * C1                            # 128
MAX_BATCH_TILE = 1024                   # amortize ~0.35us/grid-step overhead

# single weight slab (rows, 128), all row offsets 8-aligned
ROW_WA, ROW_WB, ROW_WC, ROW_WD, ROW_WE = 0, 128, 256, 384, 512
ROW_BA, ROW_BB, ROW_BD, ROW_BE = 640, 648, 656, 664
SLAB_ROWS = 672


# ---------------- fused Pallas kernel ----------------

def _fused_kernel(s_ref, w_ref, o_ref):
    s = s_ref[...].astype(jnp.float32)                               # (tb, 128)

    wa = w_ref[ROW_WA:ROW_WA + PADDED_IN, :]                         # conv1 (folded)
    wb = w_ref[ROW_WB:ROW_WB + HID, :]                               # conv2·enc·mlp0b (folded)
    wc = w_ref[ROW_WC:ROW_WC + PADDED_IN, :]                         # mlp0a (state branch)
    wd = w_ref[ROW_WD:ROW_WD + LANES, :]                             # mlp1
    we = w_ref[ROW_WE:ROW_WE + LANES, :]                             # mlp2 (lane-padded)
    ba = w_ref[ROW_BA:ROW_BA + 1, :]
    bb = w_ref[ROW_BB:ROW_BB + 1, :]
    bd = w_ref[ROW_BD:ROW_BD + 1, :]
    be = w_ref[ROW_BE:ROW_BE + 1, :]

    # conv1 (weight_norm, history reconstruction, 'same' padding, im2col and
    # time reversal all folded into wa) + ReLU
    h1 = jnp.maximum(jnp.dot(s, wa, preferred_element_type=jnp.float32) + ba, 0.0)

    # conv2 -> encoder linear -> mlp layer-0 residual branch folded into wb;
    # state branch via zero-padded wc (no lane slicing). Extra lanes stay 0.
    z = jnp.tanh(jnp.dot(h1, wb, preferred_element_type=jnp.float32)
                 + jnp.dot(s, wc, preferred_element_type=jnp.float32) + bb)
    z = jnp.tanh(jnp.dot(z, wd, preferred_element_type=jnp.float32) + bd)

    # lane-dense output (128 lanes, first NUM_ACTS meaningful)
    o_ref[...] = (jnp.dot(z, we, preferred_element_type=jnp.float32)
                  + be).astype(o_ref.dtype)


def _round_up(x, m):
    return ((x + m - 1) // m) * m


def tcn_forward(state, slab):
    if state.ndim < 2:
        state = state[None, :]
    B = state.shape[0]

    # tile ~ceil(B/2) (8-aligned, capped) so v7x gets >=2 parallel grid tiles.
    tb = min(MAX_BATCH_TILE, _round_up(pl.cdiv(B, 2), 8))
    n_tiles = pl.cdiv(B, tb)
    Bp = n_tiles * tb

    s_pad = jnp.pad(state, ((0, Bp - B), (0, PADDED_IN - state.shape[1])))

    cost = pl.CostEstimate(
        flops=int(2 * Bp * 5 * PADDED_IN * LANES),
        transcendentals=int(2 * Bp * LANES),
        bytes_accessed=int(Bp * (PADDED_IN + LANES) * 4 + SLAB_ROWS * LANES * 4),
    )

    out = pl.pallas_call(
        _fused_kernel,
        out_shape=jax.ShapeDtypeStruct((Bp, LANES), state.dtype),
        grid=(n_tiles,),
        in_specs=[pl.BlockSpec((tb, PADDED_IN), lambda i: (i, 0)),
                  pl.BlockSpec((SLAB_ROWS, LANES), lambda i: (0, 0))],
        out_specs=pl.BlockSpec((tb, LANES), lambda i: (i, 0)),
        compiler_params=pltpu.CompilerParams(dimension_semantics=("parallel",)),
        cost_estimate=cost,
    )(s_pad, slab)

    return out[:B, :NUM_ACTS]


# ---------------- parameters (deterministic synthetic init) ----------------

def init_params(key):
    params = {"conv_w": [], "conv_b": [], "mlp_w": [], "mlp_b": []}
    # weight_norm(Conv1d): the g * v/||v|| reparameterization is folded into one
    # effective weight (init_weights -> N(0, 0.01) style).  conv weights are
    # (K, C_in, C_out) == transpose of torch's (C_out, C_in, K).
    for i in range(len(CHANNEL_SIZES) - 1):
        key, k1, k2 = jax.random.split(key, 3)
        cin, cout = CHANNEL_SIZES[i], CHANNEL_SIZES[i + 1]
        params["conv_w"].append(0.01 * jax.random.normal(k1, (KERNEL_SIZE, cin, cout), jnp.float32))
        params["conv_b"].append(0.01 * jax.random.normal(k2, (cout,), jnp.float32))
    key, k1, k2 = jax.random.split(key, 3)
    enc_in = CHANNEL_SIZES[-1] * T
    params["enc_w"] = (1.0 / jnp.sqrt(enc_in)) * jax.random.normal(k1, (enc_in, OBS_OUT_DIM), jnp.float32)
    params["enc_b"] = 0.01 * jax.random.normal(k2, (OBS_OUT_DIM,), jnp.float32)
    # TODO(synk): load_teacher_policy reads a .pth checkpoint + orthogonal init;
    #             replaced by deterministic random init of the same-shaped MLP.
    mlp_dims = [TEACHER_NUM_OBS] + TEACHER_POLICY + [NUM_ACTS]
    for i in range(len(mlp_dims) - 1):
        key, k1, _ = jax.random.split(key, 3)
        din, dout = mlp_dims[i], mlp_dims[i + 1]
        params["mlp_w"].append((1.0 / jnp.sqrt(din)) * jax.random.normal(k1, (din, dout), jnp.float32))
        params["mlp_b"].append(jnp.zeros((dout,), jnp.float32))
    return params


def fold_params(params):
    """Fold history reconstruction, time reversal, 'same' padding, im2col, the
    channel-major flatten AND the linear chain conv2->encoder->mlp0(residual)
    into dense, lane-padded matrices packed into one (672,128) VMEM slab."""
    w1 = np.asarray(params["conv_w"][0])          # (K, 28, C1)
    b1 = np.asarray(params["conv_b"][0])
    w2 = np.asarray(params["conv_w"][1])          # (K, C1, C2)
    b2 = np.asarray(params["conv_b"][1])
    enc_w = np.asarray(params["enc_w"])           # (C2*T, OBS_OUT_DIM), torch c*T+t layout
    enc_b = np.asarray(params["enc_b"])
    mw = [np.asarray(w) for w in params["mlp_w"]]
    mb = [np.asarray(b) for b in params["mlp_b"]]

    # state-dim index feeding the (flipped-time) history slot y[m, ci]
    def state_idx(m, ci):
        if ci < 16:
            return FIRST + 16 * m + ci
        return FIRST + 16 * T + 12 * m + (ci - 16)

    # conv1 as (PADDED_IN, T*C1) in flipped-time, row-major (m*C1+co) layout.
    W1 = np.zeros((PADDED_IN, HID), np.float32)   # rows >= STATE_DIM stay zero
    B1 = np.zeros((1, HID), np.float32)
    for m_out in range(T):
        for k in range(KERNEL_SIZE):
            m_in = m_out + k - PAD
            if not (0 <= m_in < T):
                continue
            wk = w1[KERNEL_SIZE - 1 - k]          # flipped taps, (28, C1)
            for ci in range(NUM_CHANNELS):
                W1[state_idx(m_in, ci), m_out * C1:(m_out + 1) * C1] += wk[ci]
        B1[0, m_out * C1:(m_out + 1) * C1] = b1

    # conv2 as (T*C1, T*C2) in the same flipped-time layout.
    W2 = np.zeros((HID, T * C2), np.float32)
    B2 = np.zeros((1, T * C2), np.float32)
    for m_out in range(T):
        for k in range(KERNEL_SIZE):
            m_in = m_out + k - PAD
            if not (0 <= m_in < T):
                continue
            wk = w2[KERNEL_SIZE - 1 - k]          # (C1, C2)
            W2[m_in * C1:(m_in + 1) * C1, m_out * C2:(m_out + 1) * C2] += wk
        B2[0, m_out * C2:(m_out + 1) * C2] = b2

    # encoder linear: torch flat index is c*T + t (channel-major, time-ordered);
    # our flatten is m*C2 + c with m = T-1-t, so permute rows accordingly.
    We = np.zeros((T * C2, OBS_OUT_DIM), np.float32)
    for m in range(T):
        for c in range(C2):
            We[m * C2 + c] = enc_w[c * T + (T - 1 - m)]
    Be = enc_b.reshape(1, -1)

    wm0a, wm0b = mw[0][:FIRST], mw[0][FIRST:]     # split mlp layer 0: [state | residual]
    bm0 = mb[0].reshape(1, -1)

    # fold conv2 -> encoder -> mlp0 residual branch into one (128, 32) weight
    Wfold = W2 @ We @ wm0b
    bfold = B2 @ We @ wm0b + Be @ wm0b + bm0

    slab = np.zeros((SLAB_ROWS, LANES), np.float32)
    slab[ROW_WA:ROW_WA + PADDED_IN, :HID] = W1
    slab[ROW_WB:ROW_WB + HID, :TEACHER_POLICY[0]] = Wfold
    slab[ROW_WC:ROW_WC + FIRST, :TEACHER_POLICY[0]] = wm0a
    slab[ROW_WD:ROW_WD + TEACHER_POLICY[0], :TEACHER_POLICY[1]] = mw[1]
    slab[ROW_WE:ROW_WE + TEACHER_POLICY[1], :NUM_ACTS] = mw[2]
    slab[ROW_BA, :HID] = B1[0]
    slab[ROW_BB, :TEACHER_POLICY[0]] = bfold[0]
    slab[ROW_BD, :TEACHER_POLICY[1]] = mb[1]
    slab[ROW_BE, :NUM_ACTS] = mb[2]
    return jnp.asarray(slab)


# ---------------- unfused numpy reference (PyTorch transliteration) ----------------

def _reference_forward(state, params):
    state = np.asarray(state, np.float32)
    if state.ndim < 2:
        state = state[None, :]
    B = state.shape[0]
    hist = state[:, FIRST:]
    x = np.zeros((B, NUM_CHANNELS, T), np.float32)
    k = 16 * (T - 1)
    i = k + 16 + 12 * (T - 1)
    for j in range(T):
        x[:, :16, j] = hist[:, k:k + 16]
        x[:, 16:, j] = hist[:, i:i + 12]
        k -= 16
        i -= 12
    h = x
    n_conv = len(params["conv_w"])
    for li in range(n_conv):
        w = np.asarray(params["conv_w"][li])      # (K, Cin, Cout)
        b = np.asarray(params["conv_b"][li])
        Cout = w.shape[2]
        hp = np.pad(h, ((0, 0), (0, 0), (PAD, PAD)))
        out = np.zeros((B, Cout, T), np.float32)
        for t in range(T):
            window = hp[:, :, t:t + KERNEL_SIZE]  # (B, Cin, K)
            out[:, :, t] = np.einsum("bck,kcd->bd", window, w) + b
        if li < n_conv - 1:
            out = np.maximum(out, 0.0)
        h = out
    flat = h.reshape(B, -1)                       # channel-major flatten of (B, C, T)
    residual = flat @ np.asarray(params["enc_w"]) + np.asarray(params["enc_b"])
    z = np.concatenate([state[:, :FIRST], residual], axis=1)
    nl = len(params["mlp_w"])
    for li in range(nl):
        z = z @ np.asarray(params["mlp_w"][li]) + np.asarray(params["mlp_b"][li])
        if li < nl - 1:
            z = np.tanh(z)
    return z


if __name__ == "__main__":
    key = jax.random.PRNGKey(0)
    pkey, xkey = jax.random.split(key)
    params = init_params(pkey)
    slab = fold_params(params)
    state = jax.random.normal(xkey, (2, STATE_DIM), jnp.float32)

    action = jax.jit(tcn_forward)(state, slab)
    action = jax.block_until_ready(action)
    assert action.shape == (2, NUM_ACTS)
    assert bool(jnp.all(jnp.isfinite(action)))

    # correctness check against the unfused transliteration of the PyTorch forward
    ref = _reference_forward(np.asarray(state), params)
    assert np.allclose(np.asarray(action), ref, rtol=1e-4, atol=2e-5), (
        float(np.max(np.abs(np.asarray(action) - ref))))
    print("KERNEL_OK")
</pallas_src>

<mosaic_0001>
module attributes {stable_mosaic.version = 11 : i64} {
  func.func @_fused_kernel(%arg0: i32, %arg1: memref<8x128xf32, #tpu.memory_space<vmem>>, %arg2: memref<672x128xf32, #tpu.memory_space<vmem>>, %arg3: memref<8x128xf32, #tpu.memory_space<vmem>>) attributes {dimension_semantics = [#tpu.dimension_semantics<parallel>], iteration_bounds = array<i64: 1>, scalar_prefetch = 0 : i64, scratch_operands = 0 : i64, tpu.core_type = #tpu.core_type<tc>, window_params = [{transform_indices = @transform_0, window_bounds = array<i64: 8, 128>}, {pipeline_mode = #tpu.pipeline_mode<synchronous>, transform_indices = @transform_1, window_bounds = array<i64: 672, 128>}, {transform_indices = @transform_2, window_bounds = array<i64: 8, 128>}]} {
    %c0 = arith.constant 0 : index
    %c0_0 = arith.constant 0 : index
    %0 = vector.load %arg1[%c0, %c0_0] : memref<8x128xf32, #tpu.memory_space<vmem>>, vector<8x128xf32>
    %c0_1 = arith.constant 0 : index
    %c0_2 = arith.constant 0 : index
    %1 = vector.load %arg2[%c0_1, %c0_2] : memref<672x128xf32, #tpu.memory_space<vmem>>, vector<128x128xf32>
    %c128 = arith.constant 128 : index
    %c0_3 = arith.constant 0 : index
    %2 = vector.load %arg2[%c128, %c0_3] : memref<672x128xf32, #tpu.memory_space<vmem>>, vector<128x128xf32>
    %c256 = arith.constant 256 : index
    %c0_4 = arith.constant 0 : index
    %3 = vector.load %arg2[%c256, %c0_4] : memref<672x128xf32, #tpu.memory_space<vmem>>, vector<128x128xf32>
    %c384 = arith.constant 384 : index
    %c0_5 = arith.constant 0 : index
    %4 = vector.load %arg2[%c384, %c0_5] : memref<672x128xf32, #tpu.memory_space<vmem>>, vector<128x128xf32>
    %c512 = arith.constant 512 : index
    %c0_6 = arith.constant 0 : index
    %5 = vector.load %arg2[%c512, %c0_6] : memref<672x128xf32, #tpu.memory_space<vmem>>, vector<128x128xf32>
    %c640 = arith.constant 640 : index
    %c0_7 = arith.constant 0 : index
    %6 = vector.load %arg2[%c640, %c0_7] : memref<672x128xf32, #tpu.memory_space<vmem>>, vector<1x128xf32>
    %c648 = arith.constant 648 : index
    %c0_8 = arith.constant 0 : index
    %7 = vector.load %arg2[%c648, %c0_8] : memref<672x128xf32, #tpu.memory_space<vmem>>, vector<1x128xf32>
    %c656 = arith.constant 656 : index
    %c0_9 = arith.constant 0 : index
    %8 = vector.load %arg2[%c656, %c0_9] : memref<672x128xf32, #tpu.memory_space<vmem>>, vector<1x128xf32>
    %c664 = arith.constant 664 : index
    %c0_10 = arith.constant 0 : index
    %9 = vector.load %arg2[%c664, %c0_10] : memref<672x128xf32, #tpu.memory_space<vmem>>, vector<1x128xf32>
    %cst = arith.constant dense<0.000000e+00> : vector<8x128xf32>
    %10 = tpu.matmul %0, %1, %cst {dimension_numbers = #tpu.dot_dimension_numbers<[1], [0], [0], [1], [0, 0, 1, 1], [], []>} : vector<8x128xf32>, vector<128x128xf32>, vector<8x128xf32> -> vector<8x128xf32>
    %11 = vector.broadcast %6 : vector<1x128xf32> to vector<8x128xf32>
    %12 = arith.addf %10, %11 : vector<8x128xf32>
    %cst_11 = arith.constant 0.000000e+00 : f32
    %13 = vector.broadcast %cst_11 : f32 to vector<8x128xf32>
    %14 = arith.maximumf %12, %13 : vector<8x128xf32>
    %cst_12 = arith.constant dense<0.000000e+00> : vector<8x128xf32>
    %15 = tpu.matmul %14, %2, %cst_12 {dimension_numbers = #tpu.dot_dimension_numbers<[1], [0], [0], [1], [0, 0, 1, 1], [], []>} : vector<8x128xf32>, vector<128x128xf32>, vector<8x128xf32> -> vector<8x128xf32>
    %cst_13 = arith.constant dense<0.000000e+00> : vector<8x128xf32>
    %16 = tpu.matmul %0, %3, %cst_13 {dimension_numbers = #tpu.dot_dimension_numbers<[1], [0], [0], [1], [0, 0, 1, 1], [], []>} : vector<8x128xf32>, vector<128x128xf32>, vector<8x128xf32> -> vector<8x128xf32>
    %17 = arith.addf %15, %16 : vector<8x128xf32>
    %18 = vector.broadcast %7 : vector<1x128xf32> to vector<8x128xf32>
    %19 = arith.addf %17, %18 : vector<8x128xf32>
    %20 = math.tanh %19 : vector<8x128xf32>
    %cst_14 = arith.constant dense<0.000000e+00> : vector<8x128xf32>
    %21 = tpu.matmul %20, %4, %cst_14 {dimension_numbers = #tpu.dot_dimension_numbers<[1], [0], [0], [1], [0, 0, 1, 1], [], []>} : vector<8x128xf32>, vector<128x128xf32>, vector<8x128xf32> -> vector<8x128xf32>
    %22 = vector.broadcast %8 : vector<1x128xf32> to vector<8x128xf32>
    %23 = arith.addf %21, %22 : vector<8x128xf32>
    %24 = math.tanh %23 : vector<8x128xf32>
    %cst_15 = arith.constant dense<0.000000e+00> : vector<8x128xf32>
    %25 = tpu.matmul %24, %5, %cst_15 {dimension_numbers = #tpu.dot_dimension_numbers<[1], [0], [0], [1], [0, 0, 1, 1], [], []>} : vector<8x128xf32>, vector<128x128xf32>, vector<8x128xf32> -> vector<8x128xf32>
    %26 = vector.broadcast %9 : vector<1x128xf32> to vector<8x128xf32>
    %27 = arith.addf %25, %26 : vector<8x128xf32>
    %c0_16 = arith.constant 0 : index
    %c0_17 = arith.constant 0 : index
    %28 = vector.load %arg3[%c0_16, %c0_17] : memref<8x128xf32, #tpu.memory_space<vmem>>, vector<8x128xf32>
    tpu.vector_store %arg3[%c0_16, %c0_17], %27 {strides = array<i32>} : memref<8x128xf32, #tpu.memory_space<vmem>>, vector<8x128xf32>,
    return
  }
  func.func @transform_0(%arg0: i32) -> (i32, i32) {
    %c0_i32 = arith.constant 0 : i32
    %c0_i32_0 = arith.constant 0 : i32
    return %arg0, %c0_i32 : i32, i32
  }
  func.func @transform_1(%arg0: i32) -> (i32, i32) {
    %c0_i32 = arith.constant 0 : i32
    %c0_i32_0 = arith.constant 0 : i32
    %c0_i32_1 = arith.constant 0 : i32
    return %c0_i32, %c0_i32_0 : i32, i32
  }
  func.func @transform_2(%arg0: i32) -> (i32, i32) {
    %c0_i32 = arith.constant 0 : i32
    %c0_i32_0 = arith.constant 0 : i32
    return %arg0, %c0_i32 : i32, i32
  }
}

</mosaic_0001>

<bundles_post_ra>
// kernel: tcn_forward.1
= control target key start
LH: loop header
LB: loop body
LE: loop exit
PB: predicated region body
PF: predicated region fallthrough
CT: control target
= control target key end

     0   :  { %7 = vsyncpa [#allocation3], 0  ;;  %s904_s9 = smov [#allocation2]   ;;  %s993_s0 = inlined_call_operand.vmem [shape: f32[8,128], index: 0, kind: input, shape index: {}]   ;;  %s994_s1 = inlined_call_operand.hbm [shape: f32[672,128], index: 1, kind: input, shape index: {}]   ;;  %s995_s2 = inlined_call_operand.vmem [shape: f32[8,128], index: 2, kind: output, shape index: {}]  }
   0x1   :  { %s15_s10 = sshll.u32 %s904_s9, 4  ;;  %s880_s13 = scalar_lea.hbm %s994_s1, 10752  ;;  %s16_s10 = int_to_ptr.vmem [resolvable:$true] %s15_s10 }
   0x2   :  { %p881_p0 = scmp.ne.s32.totalorder %s994_s1, %s880_s13  ;;  %p884_p1 = scmp.lt.u32.totalorder %s880_s13, %s994_s1 }
   0x4   :  { %p886_p2 = pnand %p884_p1, %p881_p0 }
   0x6   :  { %889 = shalt.err (!%p886_p2)
}
   0x7   :  { %s890_s18 = scalar_lea.vmem %s16_s10, 10752  ;;  %p895_p4 = scmp.lt.s32.totalorder %s16_s10, %s16_s10 }
   0x8   :  { %p891_p3 = scmp.ne.s32.totalorder %s16_s10, %s890_s18  ;;  %p896_p5 = scmp.lt.s32.totalorder %s890_s18, %s890_s18 }
   0xa   :  { %p897_p6 = por %p896_p5, %p895_p4 }
   0xc   :  { %p898_p7 = pnand %p897_p6, %p891_p3 }
   0xe   :  { %901 = shalt.err (!%p898_p7)
}
   0xf   :  { %s905_s19 = smov 128   ;;  %s906_s20 = smov 8  }
  0x10   :  { %21 = dma.hbm_to_vmem [thread:$0]  %s994_s1, 10752, %s16_s10, [#allocation3], %s905_s19, %s905_s19, %s906_s20  }
  0x11   :  { %902 = dma.done.wait [#allocation3], 10752  }
  0x12   :  { %903 = vsyncadd [#allocation3], 4294956544  ;;  %v907_v0 = vmov 0.0|0.0   ;;  %vm908_vm0 = vmmov 0   ;;  %v909_v1 = vmov 0.0   ;;  %v26_v2 = vld [vmem:[#allocation2] sm:$0xff] }
  0x13   :  { %750 = vmatprep.subr.bf16.mxu0 %v907_v0  ;;  %607 = vmatprep.mubr.msk.f32.mxu0 %vm908_vm0, %v909_v1  ;;  %v27_v3 = vld [vmem:[#allocation2 + $0x8] sm:$0xff]  ;;  %v28_v4 = vld [vmem:[#allocation2 + $0x10] sm:$0xff]  ;;  %v29_v6 = vld [vmem:[#allocation2 + $0x18] sm:$0xff] }
  0x14   :  { %774 = vmatprep.subr.bf16.mxu1 %v907_v0  ;;  %642 = vmatprep.mubr.msk.f32.mxu1 %vm908_vm0, %v909_v1  ;;  %v751_v5 = vpack.c.bf16 %v27_v3, %v26_v2  ;;  %v754_v7 = vpack.c.bf16 %v29_v6, %v28_v4  ;;  %v30_v8 = vld [vmem:[#allocation2 + $0x20] sm:$0xff]  ;;  %v31_v9 = vld [vmem:[#allocation2 + $0x28] sm:$0xff]  ;;  %v60_v14 = vld [vmem:[#allocation2 + $0x110] sm:$0xff] }
  0x15   :  { %v58_v10 = vld [vmem:[#allocation2 + $0x100] sm:$0xff]  ;;  %v59_v11 = vld [vmem:[#allocation2 + $0x108] sm:$0xff]  ;;  %v757_v12 = vpack.c.bf16 %v31_v9, %v30_v8  ;;  %v61_v15 = vld [vmem:[#allocation2 + $0x118] sm:$0xff] }
  0x16   :  { %752 = vmatpush3.bf16.msra.mxu0 %v751_v5  ;;  %v775_v13 = vpack.c.bf16 %v59_v11, %v58_v10  ;;  %v32_v16 = vld [vmem:[#allocation2 + $0x30] sm:$0xff]  ;;  %v33_v17 = vld [vmem:[#allocation2 + $0x38] sm:$0xff]  ;;  %v778_v18 = vpack.c.bf16 %v61_v15, %v60_v14  ;;  %v62_v19 = vld [vmem:[#allocation2 + $0x120] sm:$0xff] }
  0x17   :  { %753 = vmatprep.subr.bf16.mxu0 %v907_v0  ;;  %v63_v20 = vld [vmem:[#allocation2 + $0x128] sm:$0xff]  ;;  %v760_v21 = vpack.c.bf16 %v33_v17, %v32_v16  ;;  %v34_v22 = vld [vmem:[#allocation2 + $0x40] sm:$0xff]  ;;  %v64_v25 = vld [vmem:[#allocation2 + $0x130] sm:$0xff] }
  0x18   :  { %776 = vmatpush3.bf16.msra.mxu1 %v775_v13  ;;  %v35_v23 = vld [vmem:[#allocation2 + $0x48] sm:$0xff]  ;;  %v781_v24 = vpack.c.bf16 %v63_v20, %v62_v19  ;;  %v65_v26 = vld [vmem:[#allocation2 + $0x138] sm:$0xff]  ;;  %v36_v28 = vld [vmem:[#allocation2 + $0x50] sm:$0xff] }
  0x19   :  { %777 = vmatprep.subr.bf16.mxu1 %v907_v0  ;;  %v763_v27 = vpack.c.bf16 %v35_v23, %v34_v22  ;;  %v37_v29 = vld [vmem:[#allocation2 + $0x58] sm:$0xff]  ;;  %v784_v30 = vpack.c.bf16 %v65_v26, %v64_v25  ;;  %v66_v31 = vld [vmem:[#allocation2 + $0x140] sm:$0xff]  ;;  %v67_v32 = vld [vmem:[#allocation2 + $0x148] sm:$0xff] }
  0x1a   :  { %755 = vmatpush3.bf16.msra.mxu0 %v754_v7  ;;  %v766_v33 = vpack.c.bf16 %v37_v29, %v36_v28  ;;  %v38_v34 = vld [vmem:[#allocation2 + $0x60] sm:$0xff]  ;;  %v39_v35 = vld [vmem:[#allocation2 + $0x68] sm:$0xff]  ;;  %v787_v36 = vpack.c.bf16 %v67_v32, %v66_v31  ;;  %v68_v37 = vld [vmem:[#allocation2 + $0x150] sm:$0xff] }
  0x1b   :  { %756 = vmatprep.subr.bf16.mxu0 %v907_v0  ;;  %v69_v38 = vld [vmem:[#allocation2 + $0x158] sm:$0xff]  ;;  %v769_v39 = vpack.c.bf16 %v39_v35, %v38_v34  ;;  %v40_v40 = vld [vmem:[#allocation2 + $0x70] sm:$0xff]  ;;  %v70_v43 = vld [vmem:[#allocation2 + $0x160] sm:$0xff] }
  0x1c   :  { %779 = vmatpush3.bf16.msra.mxu1 %v778_v18  ;;  %v41_v41 = vld [vmem:[#allocation2 + $0x78] sm:$0xff]  ;;  %v790_v42 = vpack.c.bf16 %v69_v38, %v68_v37  ;;  %v71_v44 = vld [vmem:[#allocation2 + $0x168] sm:$0xff]  ;;  %v42_v46 = vld [vmem:[#allocation2 + $0x80] sm:$0xff] }
  0x1d   :  { %780 = vmatprep.subr.bf16.mxu1 %v907_v0  ;;  %v772_v45 = vpack.c.bf16 %v41_v41, %v40_v40  ;;  %v43_v47 = vld [vmem:[#allocation2 + $0x88] sm:$0xff]  ;;  %v793_v48 = vpack.c.bf16 %v71_v44, %v70_v43  ;;  %v25_v49 = vld [vmem:[%s993_s0] sm:$0xff]  ;;  %v44_v51 = vld [vmem:[#allocation2 + $0x90] sm:$0xff] }
  0x1e   :  { %758 = vmatpush3.bf16.msra.mxu0 %v757_v12  ;;  %v799_v50 = vpack.c.bf16 %v43_v47, %v42_v46  ;;  %v45_v52 = vld [vmem:[#allocation2 + $0x98] sm:$0xff]  ;;  %v46_v54 = vld [vmem:[#allocation2 + $0xa0] sm:$0xff]  ;;  %v47_v55 = vld [vmem:[#allocation2 + $0xa8] sm:$0xff] }
  0x1f   :  { %759 = vmatprep.subr.bf16.mxu0 %v907_v0  ;;  %v802_v53 = vpack.c.bf16 %v45_v52, %v44_v51  ;;  %v805_v56 = vpack.c.bf16 %v47_v55, %v46_v54  ;;  %v48_v57 = vld [vmem:[#allocation2 + $0xb0] sm:$0xff]  ;;  %v49_v58 = vld [vmem:[#allocation2 + $0xb8] sm:$0xff]  ;;  %v50_v60 = vld [vmem:[#allocation2 + $0xc0] sm:$0xff] }
  0x20   :  { %782 = vmatpush3.bf16.msra.mxu1 %v781_v24  ;;  %v808_v59 = vpack.c.bf16 %v49_v58, %v48_v57  ;;  %v51_v61 = vld [vmem:[#allocation2 + $0xc8] sm:$0xff]  ;;  %v52_v63 = vld [vmem:[#allocation2 + $0xd0] sm:$0xff]  ;;  %v53_v2 = vld [vmem:[#allocation2 + $0xd8] sm:$0xff] }
  0x21   :  { %783 = vmatprep.subr.bf16.mxu1 %v907_v0  ;;  %v811_v62 = vpack.c.bf16 %v51_v61, %v50_v60  ;;  %v814_v3 = vpack.c.bf16 %v53_v2, %v52_v63  ;;  %v54_v4 = vld [vmem:[#allocation2 + $0xe0] sm:$0xff]  ;;  %v55_v5 = vld [vmem:[#allocation2 + $0xe8] sm:$0xff]  ;;  %v72_v7 = vld [vmem:[#allocation2 + $0x170] sm:$0xff] }
  0x22   :  { %761 = vmatpush3.bf16.msra.mxu0 %v760_v21  ;;  %v817_v6 = vpack.c.bf16 %v55_v5, %v54_v4  ;;  %v73_v8 = vld [vmem:[#allocation2 + $0x178] sm:$0xff]  ;;  %v56_v10 = vld [vmem:[#allocation2 + $0xf0] sm:$0xff]  ;;  %v74_v13 = vld [vmem:[#allocation2 + $0x180] sm:$0xff] }
  0x23   :  { %762 = vmatprep.subr.bf16.mxu0 %v907_v0  ;;  %v796_v9 = vpack.c.bf16 %v73_v8, %v72_v7  ;;  %v57_v11 = vld [vmem:[#allocation2 + $0xf8] sm:$0xff]  ;;  %v75_v14 = vld [vmem:[#allocation2 + $0x188] sm:$0xff]  ;;  %v76_v15 = vld [vmem:[#allocation2 + $0x190] sm:$0xff] }
  0x24   :  { %785 = vmatpush3.bf16.msra.mxu1 %v784_v30  ;;  %v820_v12 = vpack.c.bf16 %v57_v11, %v56_v10  ;;  %v823_v16 = vpack.c.bf16 %v75_v14, %v74_v13  ;;  %v77_v17 = vld [vmem:[#allocation2 + $0x198] sm:$0xff]  ;;  %v78_v19 = vld [vmem:[#allocation2 + $0x1a0] sm:$0xff]  ;;  %v79_v20 = vld [vmem:[#allocation2 + $0x1a8] sm:$0xff] }
  0x25   :  { %786 = vmatprep.subr.bf16.mxu1 %v907_v0  ;;  %v826_v18 = vpack.c.bf16 %v77_v17, %v76_v15  ;;  %v829_v21 = vpack.c.bf16 %v79_v20, %v78_v19  ;;  %v80_v22 = vld [vmem:[#allocation2 + $0x1b0] sm:$0xff]  ;;  %v81_v23 = vld [vmem:[#allocation2 + $0x1b8] sm:$0xff]  ;;  %v486_v25 = vld [vmem:[#allocation2 + $0x280] ss:$0 sm:$0xff] }
  0x26   :  { %764 = vmatpush3.bf16.msra.mxu0 %v763_v27  ;;  %v832_v24 = vpack.c.bf16 %v81_v23, %v80_v22  ;;  %v82_v30 = vld [vmem:[#allocation2 + $0x1c0] sm:$0xff]  ;;  %v83_v31 = vld [vmem:[#allocation2 + $0x1c8] sm:$0xff]  ;;  %v84_v35 = vld [vmem:[#allocation2 + $0x1d0] sm:$0xff] }
  0x27   :  { %765 = vmatprep.subr.bf16.mxu0 %v907_v0  ;;  %v86_v38 = vld [vmem:[#allocation2 + $0x1e0] sm:$0xff]  ;;  %v88_v41 = vld [vmem:[#allocation2 + $0x1f0] sm:$0xff]  ;;  %v91_v44 = vld [vmem:[#allocation2 + $0x208] sm:$0xff] }
  0x28   :  { %788 = vmatpush3.bf16.msra.mxu1 %v787_v36  ;;  %v85_v36 = vld [vmem:[#allocation2 + $0x1d8] sm:$0xff]  ;;  %v90_v43 = vld [vmem:[#allocation2 + $0x200] sm:$0xff]  ;;  %v96_v52 = vld [vmem:[#allocation2 + $0x230] sm:$0xff] }
  0x29   :  { %789 = vmatprep.subr.bf16.mxu1 %v907_v0  ;;  %v838_v37 = vpack.c.bf16 %v85_v36, %v84_v35  ;;  %v847_v46 = vpack.c.bf16 %v91_v44, %v90_v43  ;;  %v93_v47 = vld [vmem:[#allocation2 + $0x218] sm:$0xff]  ;;  %v98_v55 = vld [vmem:[#allocation2 + $0x240] sm:$0xff]  ;;  %v487_v58 = vld [vmem:[#allocation2 + $0x288] ss:$0 sm:$0xff] }
  0x2a   :  { %767 = vmatpush3.bf16.msra.mxu0 %v766_v33  ;;  %v835_v33 = vpack.c.bf16 %v83_v31, %v82_v30  ;;  %v100_v2 = vld [vmem:[#allocation2 + $0x250] sm:$0xff]  ;;  %v102_v5 = vld [vmem:[#allocation2 + $0x260] sm:$0xff] }
  0x2b   :  { %768 = vmatprep.subr.bf16.mxu0 %v907_v0  ;;  %v104_v8 = vld [vmem:[#allocation2 + $0x270] sm:$0xff] }
  0x2c   :  { %791 = vmatpush3.bf16.msra.mxu1 %v790_v42  ;;  %v89_v42 = vld [vmem:[#allocation2 + $0x1f8] sm:$0xff]  ;;  %v488_v11 = vld [vmem:[#allocation2 + $0x290] ss:$0 sm:$0xff] }
  0x2d   :  { %792 = vmatprep.subr.bf16.mxu1 %v907_v0 }
  0x2e   :  { %770 = vmatpush3.bf16.msra.mxu0 %v769_v39  ;;  %v87_v39 = vld [vmem:[#allocation2 + $0x1e8] sm:$0xff] }
  0x2f   :  { %771 = vmatprep.subr.bf16.mxu0 %v907_v0  ;;  %v841_v40 = vpack.c.bf16 %v87_v39, %v86_v38 }
  0x30   :  { %794 = vmatpush3.bf16.msra.mxu1 %v793_v48 }
  0x31   :  { %795 = vmatprep.subr.bf16.mxu1 %v907_v0 }
  0x32   :  { %773 = vmatpush3.bf16.msra.mxu0 %v772_v45  ;;  %v92_v45 = vld [vmem:[#allocation2 + $0x210] sm:$0xff] }
  0x33   :  { %798 = vmatprep.subr.bf16.mxu0 %v907_v0  ;;  %v850_v48 = vpack.c.bf16 %v93_v47, %v92_v45 }
  0x34   :  { %797 = vmatpush3.bf16.msra.mxu1 %v796_v9  ;;  %v105_v9 = vld [vmem:[#allocation2 + $0x278] sm:$0xff] }
  0x35   :  { %608 = vmatmul.mubr.f32.vlgmr.msra.gmra.mrb[0].mxu0 %v25_v49  ;;  %822 = vmatprep.subr.bf16.mxu1 %v907_v0  ;;  %v868_v10 = vpack.c.bf16 %v105_v9, %v104_v8 }
  0x36   :  { %800 = vmatpush3.bf16.msra.mxu0 %v799_v50  ;;  %677 = vmatprep.mubr.msk.f32.mxu0 %vm908_vm0, %v909_v1  ;;  %v95_v50 = vld [vmem:[#allocation2 + $0x228] sm:$0xff] }
  0x37   :  { %801 = vmatprep.subr.bf16.mxu0 %v907_v0  ;;  %643 = vmatmul.mubr.f32.vlgmr.msra.gmra.mrb[0].mxu1 %v25_v49  ;;  %v94_v49 = vld [vmem:[#allocation2 + $0x220] sm:$0xff] }
  0x38   :  { %712 = vmatprep.mubr.msk.f32.mxu1 %vm908_vm0, %v909_v1  ;;  %824 = vmatpush3.bf16.msra.mxu1 %v823_v16  ;;  %v853_v51 = vpack.c.bf16 %v95_v50, %v94_v49  ;;  %v489_v16 = vld [vmem:[#allocation2 + $0x298] ss:$0 sm:$0xff] }
  0x39   :  { %825 = vmatprep.subr.bf16.mxu1 %v907_v0 }
  0x3a   :  { %803 = vmatpush3.bf16.msra.mxu0 %v802_v53  ;;  %v97_v53 = vld [vmem:[#allocation2 + $0x238] sm:$0xff] }
  0x3b   :  { %804 = vmatprep.subr.bf16.mxu0 %v907_v0  ;;  %v856_v54 = vpack.c.bf16 %v97_v53, %v96_v52 }
  0x3c   :  { %827 = vmatpush3.bf16.msra.mxu1 %v826_v18 }
  0x3d   :  { %828 = vmatprep.subr.bf16.mxu1 %v907_v0 }
  0x3e   :  { %806 = vmatpush3.bf16.msra.mxu0 %v805_v56  ;;  %v99_v56 = vld [vmem:[#allocation2 + $0x248] sm:$0xff] }
  0x3f   :  { %807 = vmatprep.subr.bf16.mxu0 %v907_v0  ;;  %v859_v57 = vpack.c.bf16 %v99_v56, %v98_v55 }
  0x40   :  { %830 = vmatpush3.bf16.msra.mxu1 %v829_v21 }
  0x41   :  { %831 = vmatprep.subr.bf16.mxu1 %v907_v0 }
  0x42   :  { %809 = vmatpush3.bf16.msra.mxu0 %v808_v59 }
  0x43   :  { %810 = vmatprep.subr.bf16.mxu0 %v907_v0 }
  0x44   :  { %833 = vmatpush3.bf16.msra.mxu1 %v832_v24 }
  0x45   :  { %834 = vmatprep.subr.bf16.mxu1 %v907_v0 }
  0x46   :  { %812 = vmatpush3.bf16.msra.mxu0 %v811_v62 }
  0x47   :  { %813 = vmatprep.subr.bf16.mxu0 %v907_v0 }
  0x48   :  { %836 = vmatpush3.bf16.msra.mxu1 %v835_v33 }
  0x49   :  { %837 = vmatprep.subr.bf16.mxu1 %v907_v0 }
  0x4a   :  { %815 = vmatpush3.bf16.msra.mxu0 %v814_v3  ;;  %v101_v3 = vld [vmem:[#allocation2 + $0x258] sm:$0xff] }
  0x4b   :  { %816 = vmatprep.subr.bf16.mxu0 %v907_v0  ;;  %v862_v4 = vpack.c.bf16 %v101_v3, %v100_v2 }
  0x4c   :  { %839 = vmatpush3.bf16.msra.mxu1 %v838_v37 }
  0x4d   :  { %840 = vmatprep.subr.bf16.mxu1 %v907_v0 }
  0x4e   :  { %818 = vmatpush3.bf16.msra.mxu0 %v817_v6  ;;  %v103_v6 = vld [vmem:[#allocation2 + $0x268] sm:$0xff] }
  0x4f   :  { %819 = vmatprep.subr.bf16.mxu0 %v907_v0  ;;  %v865_v7 = vpack.c.bf16 %v103_v6, %v102_v5 }
  0x50   :  { %842 = vmatpush3.bf16.msra.mxu1 %v841_v40 }
  0x51   :  { %843 = vmatprep.subr.bf16.mxu1 %v907_v0 }
  0x52   :  { %821 = vmatpush3.bf16.msra.mxu0 %v820_v12 }
  0x53   :  { %846 = vmatprep.subr.bf16.mxu0 %v907_v0 }
 0x108   :  { %v180_v26 = vpop.f32.mrb[0].mxu0 }
 0x109   :  { %v181_v27 = vadd.f32 %v486_v25, %v180_v26  ;;  %v609_v28 = vpop.f32.mrb[1].mxu0 }
 0x10a   :  { %v251_v32 = vpop.f32.mrb[0].mxu1 }
 0x10b   :  { %v184_v29 = vmax.f32 %v181_v27, 0.0  ;;  %v644_v34 = vpop.f32.mrb[1].mxu1 }
 0x10d   :  { %678 = vmatmul.mubr.f32.vlgmr.msra.gmra.mrb[2].mxu0 %v184_v29 }
 0x10e   :  { %747 = vmatprep.mubr.msk.f32.mxu0 %vm908_vm0, %v909_v1  ;;  %v844_v1 = vpack.c.bf16 %v89_v42, %v88_v41  ;;  %848 = vmatpush3.bf16.msra.mxu0 %v847_v46 }
 0x10f   :  { %849 = vmatprep.subr.bf16.mxu0 %v907_v0 }
 0x110   :  { %845 = vmatpush3.bf16.msra.mxu1 %v844_v1 }
 0x112   :  { %851 = vmatpush3.bf16.msra.mxu0 %v850_v48 }
 0x113   :  { %852 = vmatprep.subr.bf16.mxu0 %v907_v0 }
 0x116   :  { %854 = vmatpush3.bf16.msra.mxu0 %v853_v51 }
 0x117   :  { %855 = vmatprep.subr.bf16.mxu0 %v907_v0 }
 0x11a   :  { %857 = vmatpush3.bf16.msra.mxu0 %v856_v54 }
 0x11b   :  { %858 = vmatprep.subr.bf16.mxu0 %v907_v0 }
 0x11e   :  { %860 = vmatpush3.bf16.msra.mxu0 %v859_v57 }
 0x11f   :  { %861 = vmatprep.subr.bf16.mxu0 %v907_v0 }
 0x122   :  { %863 = vmatpush3.bf16.msra.mxu0 %v862_v4 }
 0x123   :  { %864 = vmatprep.subr.bf16.mxu0 %v907_v0 }
 0x126   :  { %866 = vmatpush3.bf16.msra.mxu0 %v865_v7 }
 0x127   :  { %867 = vmatprep.subr.bf16.mxu0 %v907_v0 }
 0x12a   :  { %869 = vmatpush3.bf16.msra.mxu0 %v868_v10 }
 0x1e0   :  { %v321_v59 = vpop.f32.mrb[2].mxu0 }
 0x1e1   :  { %v322_v60 = vadd.f32 %v321_v59, %v251_v32  ;;  %v679_v61 = vpop.f32.mrb[3].mxu0 }
 0x1e3   :  { %v329_v62 = vadd.f32 %v487_v58, %v322_v60 }
 0x1e5   :  { %876 = vtanh.f32 %v329_v62 }
 0x1ef   :  { %v877_v63 = vpop.eup %876 }
 0x1f0   :  { %713 = vmatmul.mubr.f32.vlgmr.msra.gmra.mrb[2].mxu1 %v877_v63 }
 0x2c3   :  { %v401_v12 = vpop.f32.mrb[2].mxu1 }
 0x2c4   :  { %v402_v13 = vadd.f32 %v488_v11, %v401_v12  ;;  %v714_v14 = vpop.f32.mrb[3].mxu1 }
 0x2c6   :  { %878 = vtanh.f32 %v402_v13 }
 0x2d0   :  { %v879_v15 = vpop.eup %878 }
 0x2d1   :  { %748 = vmatmul.mubr.f32.vlgmr.msra.gmra.mrb[4].mxu0 %v879_v15 }
 0x3a4   :  { %v476_v17 = vpop.f32.mrb[4].mxu0 }
 0x3a5   :  { %v477_v18 = vadd.f32 %v489_v16, %v476_v17  ;;  %v749_v19 = vpop.f32.mrb[5].mxu0 }
 0x3a7   :  { %480 = vst [vmem:[%s995_s2] sm:$0xff] %v477_v18 }
 0x3a8   :  { %485 = vsyncpa [#allocation3], 1 }

</bundles_post_ra>
